<compile_context>
chip_gen: v6e
topology: v6e:2x2x1
jax: 0.10.0
libtpu: 0.0.40
codegen_flags: <defaults>
</compile_context>

<pallas_src>
import math

import jax
import jax.numpy as jnp
from jax.experimental import pallas as pl
from jax.experimental.pallas import tpu as pltpu

LN_EPS = 1e-12                      # config.layer_norm_eps
VMEM_LIMIT = 64 * 1024 * 1024       # explicit scoped-VMEM budget


def _layernorm(x, g, b, eps=LN_EPS):
    # one-pass mean / variance (sum and sum-of-squares), f32 in/out
    mu = jnp.mean(x, axis=-1, keepdims=True)
    msq = jnp.mean(x * x, axis=-1, keepdims=True)
    var = msq - mu * mu
    return (x - mu) * jax.lax.rsqrt(var + eps) * g + b


def _gelu_exact(x):
    # nn.GELU() default: exact erf-based GELU
    return 0.5 * x * (1.0 + jax.lax.erf(x / math.sqrt(2.0)))


# ----------------------- Pallas kernels -----------------------

def qkv_proj_kernel(x_ref, w_ref, b_ref, out_ref):
    # fused Q/K/V projection: one x @ Wqkv matmul (scale already folded into Wq).
    x = x_ref[0]                                                   # (TS, D) bf16
    y = jnp.dot(x, w_ref[...], preferred_element_type=jnp.float32) + b_ref[...]
    out_ref[0] = y.astype(out_ref.dtype)                           # (TS, 3D) bf16


def attn_ffn_kernel(x_ref, q_ref, k_ref, v_ref, mask_ref,
                    wo3_ref, bo_ref, g1_ref, be1_ref,
                    w1_ref, b1_ref, w2_ref, b2_ref, g2_ref, be2_ref,
                    out_ref, prob_ref):
    # per (batch, q-row tile) program: attention + out-proj + LN1 + FFN + LN2
    q = q_ref[0]                    # (H, TQ, dh) bf16 (scale pre-folded)
    k = k_ref[0]                    # (H, S,  dh) bf16
    v = v_ref[0]                    # (H, S,  dh) bf16
    mask = mask_ref[0]              # (1, S) f32 additive mask

    # scores, batched over heads on the MXU, f32 accumulation
    sc = jax.lax.dot_general(q, k, (((2,), (2,)), ((0,), (0,))),
                             preferred_element_type=jnp.float32)   # (H, TQ, S)
    sc = sc + mask                                                 # broadcast keys mask

    # softmax over keys (EUP reciprocal instead of a VALU divide)
    m = jnp.max(sc, axis=-1, keepdims=True)
    e = jnp.exp(sc - m)
    inv = pl.reciprocal(jnp.sum(e, axis=-1, keepdims=True), approx=True)
    p = e * inv                                                    # (H, TQ, S) f32
    p_bf = p.astype(jnp.bfloat16)
    prob_ref[0] = p_bf                                             # bf16 attn probs out
    # TODO(synk): attn_dropout / context_dropout / FFN dropout omitted (eval identity).

    # context, batched over heads
    ctx = jax.lax.dot_general(p_bf, v, (((2,), (1,)), ((0,), (0,))),
                              preferred_element_type=jnp.float32)  # (H, TQ, dh)

    # output projection with head-batched weight (H, dh, D), then sum over heads
    per_head = jax.lax.dot_general(ctx.astype(jnp.bfloat16), wo3_ref[...],
                                   (((2,), (1,)), ((0,), (0,))),
                                   preferred_element_type=jnp.float32)  # (H, TQ, D)
    attn = jnp.sum(per_head, axis=0) + bo_ref[...]                 # (TQ, D) f32

    # residual + LayerNorm 1
    h1 = _layernorm(x_ref[0].astype(jnp.float32) + attn, g1_ref[...], be1_ref[...])
    h1_bf = h1.astype(jnp.bfloat16)

    # position-wise feed forward (bf16 weights, f32 accumulation)
    ff = jnp.dot(h1_bf, w1_ref[...], preferred_element_type=jnp.float32) + b1_ref[...]
    ff = _gelu_exact(ff).astype(jnp.bfloat16)
    ff = jnp.dot(ff, w2_ref[...], preferred_element_type=jnp.float32) + b2_ref[...]

    # residual + LayerNorm 2
    out_ref[0] = _layernorm(h1 + ff, g2_ref[...], be2_ref[...]).astype(out_ref.dtype)


# ----------------------- wrapper -----------------------

def _pick_tile(S):
    for t in (512, 256, 128):
        if S % t == 0:
            return t
    return S  # small / irregular sequences: one tile = whole sequence


def bert_encoder_layer_forward(params, inputs, attention_mask, *, num_heads):
    """inputs: (B, S, D) f32; attention_mask: additive mask broadcastable to (B, 1, S).
    Returns (outputs (B,S,D) f32, attn_prob (B,H,S,S) bf16)."""
    B, S, D = inputs.shape
    F = params["w1"].shape[1]
    d_head = D // num_heads
    scale = float(d_head) ** 0.5
    tq = _pick_tile(S)

    # fold 1/sqrt(d_head) into the Q projection; fuse Q/K/V weights -> (D, 3D)
    wqkv = jnp.concatenate(
        [params["wq"] / scale, params["wk"], params["wv"]], axis=1).astype(jnp.bfloat16)
    bqkv = jnp.concatenate(
        [params["bq"] / scale, params["bk"], params["bv"]], axis=1)           # f32 (1, 3D)

    x_bf = inputs.astype(jnp.bfloat16)
    cparams = pltpu.CompilerParams(dimension_semantics=("parallel", "parallel"),
                                   vmem_limit_bytes=VMEM_LIMIT)

    # ---- kernel 1: fused QKV projection, tiled over (B, S tiles) ----
    qkv = pl.pallas_call(
        qkv_proj_kernel,
        out_shape=jax.ShapeDtypeStruct((B, S, 3 * D), jnp.bfloat16),
        grid=(B, S // tq),
        in_specs=[pl.BlockSpec((1, tq, D), lambda b, si: (b, si, 0)),
                  pl.BlockSpec((D, 3 * D), lambda b, si: (0, 0)),
                  pl.BlockSpec((1, 3 * D), lambda b, si: (0, 0))],
        out_specs=pl.BlockSpec((1, tq, 3 * D), lambda b, si: (b, si, 0)),
        compiler_params=cparams,
    )(x_bf, wqkv, bqkv)

    # wrapper-side layout plumbing: split heads -> (B, H, S, d_head), no in-kernel transposes
    def to_heads(t):
        return t.reshape(B, S, num_heads, d_head).transpose(0, 2, 1, 3)
    q = to_heads(qkv[..., 0:D])
    k = to_heads(qkv[..., D:2 * D])
    v = to_heads(qkv[..., 2 * D:3 * D])

    wo3 = params["wo"].reshape(num_heads, d_head, D).astype(jnp.bfloat16)
    w1_bf = params["w1"].astype(jnp.bfloat16)
    w2_bf = params["w2"].astype(jnp.bfloat16)
    mask = jnp.broadcast_to(attention_mask.astype(jnp.float32).reshape(B, -1, S)[:, :1, :],
                            (B, 1, S))

    # ---- kernel 2: attention + out-proj + LN1 + FFN + LN2, tiled over (B, q-row tiles) ----
    out, probs = pl.pallas_call(
        attn_ffn_kernel,
        out_shape=(jax.ShapeDtypeStruct((B, S, D), jnp.float32),
                   jax.ShapeDtypeStruct((B, num_heads, S, S), jnp.bfloat16)),
        grid=(B, S // tq),
        in_specs=[pl.BlockSpec((1, tq, D), lambda b, qi: (b, qi, 0)),                    # x tile
                  pl.BlockSpec((1, num_heads, tq, d_head), lambda b, qi: (b, 0, qi, 0)),  # q tile
                  pl.BlockSpec((1, num_heads, S, d_head), lambda b, qi: (b, 0, 0, 0)),    # k full
                  pl.BlockSpec((1, num_heads, S, d_head), lambda b, qi: (b, 0, 0, 0)),    # v full
                  pl.BlockSpec((1, 1, S), lambda b, qi: (b, 0, 0)),                       # mask
                  pl.BlockSpec((num_heads, d_head, D), lambda b, qi: (0, 0, 0)),          # wo3
                  pl.BlockSpec((1, D), lambda b, qi: (0, 0)),                             # bo
                  pl.BlockSpec((1, D), lambda b, qi: (0, 0)),                             # ln1 g
                  pl.BlockSpec((1, D), lambda b, qi: (0, 0)),                             # ln1 b
                  pl.BlockSpec((D, F), lambda b, qi: (0, 0)),                             # w1
                  pl.BlockSpec((1, F), lambda b, qi: (0, 0)),                             # b1
                  pl.BlockSpec((F, D), lambda b, qi: (0, 0)),                             # w2
                  pl.BlockSpec((1, D), lambda b, qi: (0, 0)),                             # b2
                  pl.BlockSpec((1, D), lambda b, qi: (0, 0)),                             # ln2 g
                  pl.BlockSpec((1, D), lambda b, qi: (0, 0))],                            # ln2 b
        out_specs=(pl.BlockSpec((1, tq, D), lambda b, qi: (b, qi, 0)),
                   pl.BlockSpec((1, num_heads, tq, S), lambda b, qi: (b, 0, qi, 0))),
        compiler_params=cparams,
    )(x_bf, q, k, v, mask,
      wo3, params["bo"], params["ln1_g"], params["ln1_b"],
      w1_bf, params["b1"], w2_bf, params["b2"], params["ln2_g"], params["ln2_b"])
    return out, probs


# ----------------------- deterministic parameter init -----------------------

def init_layer_params(key, d_model, ffn_dim, std=0.02):
    D, F = d_model, ffn_dim
    ks = jax.random.split(key, 6)

    def lin(k, din, dout):
        # PyTorch Linear weight (out, in); stored transposed as (in, out)
        return (jax.random.normal(k, (dout, din), jnp.float32) * std).T

    return dict(
        wq=lin(ks[0], D, D), bq=jnp.zeros((1, D), jnp.float32),
        wk=lin(ks[1], D, D), bk=jnp.zeros((1, D), jnp.float32),
        wv=lin(ks[2], D, D), bv=jnp.zeros((1, D), jnp.float32),
        wo=lin(ks[3], D, D), bo=jnp.zeros((1, D), jnp.float32),
        ln1_g=jnp.ones((1, D), jnp.float32), ln1_b=jnp.zeros((1, D), jnp.float32),
        w1=lin(ks[4], D, F), b1=jnp.zeros((1, F), jnp.float32),
        w2=lin(ks[5], F, D), b2=jnp.zeros((1, D), jnp.float32),
        ln2_g=jnp.ones((1, D), jnp.float32), ln2_b=jnp.zeros((1, D), jnp.float32),
    )


if __name__ == "__main__":
    cfg = dict(d_model=32, num_att_heads=4, feed_forward_dim=64,
               layer_norm_eps=1e-12, drop_out_raito=0.1)

    key = jax.random.PRNGKey(0)
    pkey, xkey = jax.random.split(key)
    params = init_layer_params(pkey, cfg["d_model"], cfg["feed_forward_dim"])

    B, S = 2, 8
    x = jax.random.normal(xkey, (B, S, cfg["d_model"]), jnp.float32)

    # additive key-padding mask: last two positions of batch element 1 are padding
    key_pad = jnp.zeros((B, S), jnp.bool_).at[1, 6:].set(True)
    attn_mask = jnp.where(key_pad, -1e9, 0.0).astype(jnp.float32).reshape(B, 1, S)

    out, attn_prob = bert_encoder_layer_forward(
        params, x, attn_mask, num_heads=cfg["num_att_heads"])

    jax.block_until_ready(out)
    jax.block_until_ready(attn_prob)
    print("KERNEL_OK")
</pallas_src>

<mosaic_0001>
module attributes {stable_mosaic.version = 11 : i64} {
  func.func @qkv_proj_kernel(%arg0: i32, %arg1: i32, %arg2: memref<1x8x32xbf16, #tpu.memory_space<vmem>>, %arg3: memref<32x96xbf16, #tpu.memory_space<vmem>>, %arg4: memref<1x96xf32, #tpu.memory_space<vmem>>, %arg5: memref<1x8x96xbf16, #tpu.memory_space<vmem>>) attributes {dimension_semantics = [#tpu.dimension_semantics<parallel>, #tpu.dimension_semantics<parallel>], iteration_bounds = array<i64: 2, 1>, scalar_prefetch = 0 : i64, scratch_operands = 0 : i64, tpu.core_type = #tpu.core_type<tc>, window_params = [{transform_indices = @transform_0, window_bounds = array<i64: 1, 8, 32>}, {pipeline_mode = #tpu.pipeline_mode<synchronous>, transform_indices = @transform_1, window_bounds = array<i64: 32, 96>}, {pipeline_mode = #tpu.pipeline_mode<synchronous>, transform_indices = @transform_2, window_bounds = array<i64: 1, 96>}, {transform_indices = @transform_3, window_bounds = array<i64: 1, 8, 96>}]} {
    %c0 = arith.constant 0 : index
    %c0_0 = arith.constant 0 : index
    %c0_1 = arith.constant 0 : index
    %0 = vector.load %arg2[%c0, %c0_0, %c0_1] : memref<1x8x32xbf16, #tpu.memory_space<vmem>>, vector<1x8x32xbf16>
    %1 = vector.shape_cast %0 : vector<1x8x32xbf16> to vector<8x32xbf16>
    %c0_2 = arith.constant 0 : index
    %c0_3 = arith.constant 0 : index
    %2 = vector.load %arg3[%c0_2, %c0_3] : memref<32x96xbf16, #tpu.memory_space<vmem>>, vector<32x96xbf16>
    %cst = arith.constant dense<0.000000e+00> : vector<8x96xf32>
    %3 = tpu.matmul %1, %2, %cst {dimension_numbers = #tpu.dot_dimension_numbers<[1], [0], [0], [1], [0, 0, 1, 1], [], []>} : vector<8x32xbf16>, vector<32x96xbf16>, vector<8x96xf32> -> vector<8x96xf32>
    %c0_4 = arith.constant 0 : index
    %c0_5 = arith.constant 0 : index
    %4 = vector.load %arg4[%c0_4, %c0_5] : memref<1x96xf32, #tpu.memory_space<vmem>>, vector<1x96xf32>
    %5 = vector.broadcast %4 : vector<1x96xf32> to vector<8x96xf32>
    %6 = arith.addf %3, %5 : vector<8x96xf32>
    %7 = arith.truncf %6 : vector<8x96xf32> to vector<8x96xbf16>
    %c0_6 = arith.constant 0 : index
    %c0_7 = arith.constant 0 : index
    %c0_8 = arith.constant 0 : index
    %8 = vector.load %arg5[%c0_6, %c0_7, %c0_8] : memref<1x8x96xbf16, #tpu.memory_space<vmem>>, vector<1x8x96xbf16>
    %9 = vector.shape_cast %8 : vector<1x8x96xbf16> to vector<8x96xbf16>
    %10 = vector.shape_cast %7 : vector<8x96xbf16> to vector<1x8x96xbf16>
    tpu.vector_store %arg5[%c0_6, %c0_7, %c0_8], %10 {strides = array<i32>} : memref<1x8x96xbf16, #tpu.memory_space<vmem>>, vector<1x8x96xbf16>,
    return
  }
  func.func @transform_0(%arg0: i32, %arg1: i32) -> (i32, i32, i32) {
    %c0_i32 = arith.constant 0 : i32
    %c0_i32_0 = arith.constant 0 : i32
    return %arg0, %arg1, %c0_i32 : i32, i32, i32
  }
  func.func @transform_1(%arg0: i32, %arg1: i32) -> (i32, i32) {
    %c0_i32 = arith.constant 0 : i32
    %c0_i32_0 = arith.constant 0 : i32
    %c0_i32_1 = arith.constant 0 : i32
    return %c0_i32, %c0_i32_0 : i32, i32
  }
  func.func @transform_2(%arg0: i32, %arg1: i32) -> (i32, i32) {
    %c0_i32 = arith.constant 0 : i32
    %c0_i32_0 = arith.constant 0 : i32
    %c0_i32_1 = arith.constant 0 : i32
    return %c0_i32, %c0_i32_0 : i32, i32
  }
  func.func @transform_3(%arg0: i32, %arg1: i32) -> (i32, i32, i32) {
    %c0_i32 = arith.constant 0 : i32
    %c0_i32_0 = arith.constant 0 : i32
    return %arg0, %arg1, %c0_i32 : i32, i32, i32
  }
}

</mosaic_0001>

<bundles_post_ra>
// kernel: tpu_custom_call.1
= control target key start
LH: loop header
LB: loop body
LE: loop exit
PB: predicated region body
PF: predicated region fallthrough
CT: control target
= control target key end

     0   :  { %8 = vsyncpa [#allocation3], 0  ;;  %s853_s0 = inlined_call_operand.hbm [shape: bf16[2,8,32], index: 0, kind: input, shape index: {}]   ;;  %s854_s1 = inlined_call_operand.hbm [shape: bf16[32,96], index: 1, kind: input, shape index: {}]   ;;  %s855_s2 = inlined_call_operand.vmem [shape: f32[1,96], index: 2, kind: input, shape index: {}]   ;;  %s856_s3 = inlined_call_operand.hbm [shape: bf16[2,8,96], index: 3, kind: output, shape index: {}]  }
   0x1   :  { %10 = vsyncpa [#allocation3 + $0x1], 0 }
   0x2   :  { %11 = vsyncpa [#allocation6], 0 }
   0x3   :  { %12 = vsyncpa [#allocation4], 0 }
   0x4   :  { %14 = vsyncpa [#allocation4 + $0x1], 0  ;;  %s671_s12 = smov 0   ;;  %s673_s13 = smov 0  }
   0x5   :  { %s675_s14 = smov 0   ;;  %s677_s15 = smov 0  }
   0x6   :  { %s679_s16 = smov 0   ;;  %s681_s17 = smov 0  }
   0x7 LB: > { %s395_s18 = sadd.s32 4294967295, %s642_s17   ;;  %s396_s19 = sadd.s32 4294967294, %s642_s17   ;;  %s642_s17 = sphi %s681_s17, %s20_s17   ;;  %s638_s16 = sphi %s679_s16, %s874_s16   ;;  %s634_s15 = sphi %s677_s15, %s873_s15   ;;  %s630_s14 = sphi %s675_s14, %s872_s14   ;;  %s626_s13 = sphi %s673_s13, %s871_s13   ;;  %s622_s12 = sphi %s671_s12, %s870_s12  }
   0x8   : > { %p54_p0 = scmp.ne.s32.totalorder %s626_s13, %s622_s12  ;;  %p705_p1 = scmp.eq.s32.totalorder %s395_s18, 0 }
   0x9   : > { %p709_p2 = scmp.eq.s32.totalorder %s395_s18, 1  ;;  %p128_p3 = scmp.eq.s32.totalorder %s396_s19, 1 }
   0xa   : > { %p715_p4 = por %p705_p1, %p54_p0  ;;  %p397_p5 = scmp.ge.s32.totalorder %s642_s17, 1 }
   0xb   : > { %p720_p6 = por %p128_p3, %p54_p0  ;;  %p135_p7 = scmp.lt.s32.totalorder %s642_s17, 3 }
   0xc   : > { %s860_s22 = scalar_select %p715_p4, 1, 0 }
   0xd   : > { %s861_s23 = scalar_select %p720_p6, 1, 0 }
   0xe   : > { %p725_p8 = pnand %p397_p5, %p135_p7  ;;  %s644_s25 = smov [#allocation5]  }
   0xf   : > { %s147_s26 = sshll.u32 %s644_s25, 4  ;;  %s32_s28 = sadd.s32 1, %s638_s16  ;;  %s148_s26 = int_to_ptr.vmem [resolvable:$true] %s147_s26 }
  0x10   : > { %p433_p9 = pneg %p725_p8  ;;  %s515_s29 = scalar_lea.vmem %s148_s26, 256 }
  0x11   : > { %p516_p13 = scmp.ne.s32.totalorder %s148_s26, %s515_s29  ;;  %p523_p5 = scmp.lt.s32.totalorder %s148_s26, %s148_s26 }
  0x12   : > { %p734_p11 = pnand %p433_p9, %p705_p1  ;;  %p524_p7 = scmp.lt.s32.totalorder %s515_s29, %s515_s29 }
  0x14   : > { %p506_p12 = pneg %p734_p11  ;;  %p525_p6 = por %p524_p7, %p523_p5 }
  0x16   : > { %p518_p0 = pnand %p516_p13, %p506_p12 }
  0x18   : > { %p519_p3 = pneg %p518_p0 }
  0x1a   : > { %p526_p4 = pnand %p525_p6, %p519_p3 }
  0x1c   : > { %529 = shalt.err (!%p526_p4)
}
  0x1d   : > { %s645_s30 = smov 64   ;;  %s646_s4 = smov 4  }
  0x1e   : > { %436 = dma.hbm_to_vmem [thread:$0]  (!%p734_p11), %s854_s1, 256, %s148_s26, [#allocation6], %s645_s30, %s645_s30, %s646_s4  }
  0x1f   : > { %p34_p6 = scmp.ge.s32.totalorder %s32_s28, 2  ;;  %s41_s7 = sadd.s32 1, %s630_s14 }
  0x20   : > { %p48_p4 = scmp.ne.s32.totalorder %s630_s14, %s626_s13  ;;  %p49_p9 = scmp.eq.s32.totalorder %s642_s17, 0 }
  0x21   : > { %s876_s28 = smov (%p34_p6, %s32_s28), 0  ;;  %p446_p0 = scmp.lt.s32.totalorder %s642_s17, 2 }
  0x22   : > { %p752_p12 = por %p49_p9, %p48_p4  ;;  %p758_p13 = por %p709_p2, %p48_p4 }
  0x23   : > { %s36_s10 = ssub.s32 %s638_s16, %s876_s28  ;;  %s164_s11 = sand.u32 1, %s630_s14  }
  0x24   : > { %p39_p11 = scmp.eq.s32.totalorder %s36_s10, 0  ;;  %s400_s18 = sshll.u32 %s164_s11, 2 }
  0x25   : > { %s401_s25 = sshll.u32 %s638_s16, 6  ;;  %s168_s30 = scalar_lea.vmem [#allocation2], %s400_s18 }
  0x26   : > { %s767_s19 = scalar_select %p39_p11, %s630_s14, %s41_s7  }
  0x27   : > { %s174_s29 = scalar_lea.hbm %s853_s0, %s401_s25  ;;  %s176_s4 = sshll.u32 %s168_s30, 4  ;;  %s177_s4 = int_to_ptr.vmem [resolvable:$true] %s176_s4 }
  0x28   : > { %p775_p2 = pnand %p446_p0, %p752_p12  ;;  %s165_s5 = scalar_lea.sflag [#allocation3], %s164_s11 }
  0x29   : > { %s543_s6 = scalar_lea.vmem %s177_s4, 64  ;;  %s647_s7 = smov [#allocation2]  }
  0x2a   : > { %p532_p3 = pneg %p775_p2  ;;  %p544_p5 = scmp.ne.s32.totalorder %s177_s4, %s543_s6 }
  0x2b   : > { %s548_s10 = sshll.u32 %s647_s7, 4  ;;  %s549_s10 = int_to_ptr.vmem [resolvable:$false] %s548_s10 }
  0x2c   : > { %p546_p7 = pnand %p544_p5, %p532_p3  ;;  %s550_s25 = scalar_lea.vmem %s549_s10, 128 }
  0x2d   : > { %p551_p4 = scmp.lt.s32.totalorder %s177_s4, %s549_s10  ;;  %p552_p9 = scmp.lt.s32.totalorder %s550_s25, %s543_s6 }
  0x2e   : > { %p547_p6 = pneg %p546_p7 }
  0x2f   : > { %p553_p11 = por %p552_p9, %p551_p4 }
  0x31   : > { %p554_p10 = pnand %p553_p11, %p547_p6 }
  0x33   : > { %557 = shalt.err (!%p554_p10)
}
  0x34   : > { %440 = dma.hbm_to_vmem [thread:$0]  (!%p775_p2), %s174_s29, 64, %s177_s4, %s165_s5  }
  0x35   : > { %185 = sbr.rel (%p725_p8) target bundleno = 281 (0x119), region = 32  ;;  %s786_s8 = sand.u32 (!%p725_p8), 1, %s626_s13  }
  0x36   : > { %s403_s11 = sshll.u32 (!%p725_p8), %s786_s8, 2  ;;  %s188_s18 = scalar_lea.sflag (!%p725_p8), [#allocation3], %s786_s8 }
  0x37   : > { %s191_s26 = scalar_lea.vmem (!%p725_p8), [#allocation2], %s403_s11  ;;  %p867_p12 = scmp.ne.s32.totalorder (!%p725_p8), %s860_s22, 0 }
  0x3a   : > { %609 = dma.done.wait (%p867_p12), %s188_s18, 64  }
  0x3b   : > { %611 = vsyncadd (%p867_p12), %s188_s18, 4294967232 }
  0x3c   : > { %613 = dma.done.wait (%p705_p1), [#allocation6], 256  }
  0x3d   : > { %615 = vsyncadd (%p705_p1), [#allocation6], 4294967040  ;;  %v648_v0 = vmov 0.0   ;;  %vm649_vm0 = vmmov 0   ;;  %v502_v1 = vld [vmem:[#allocation5 + $0x8] sm:$0xff]   ;;  %v503_v2 = vld [vmem:[#allocation5] sm:$0xff]  }
  0x3e   : > { %417 = vmatprep.subr.bf16.mxu0 %v648_v0  ;;  %421 = vmatprep.mubr.msk.bf16.mxu0 %vm649_vm0, %v648_v0  ;;  %v219_v3 = vld [vmem:[%s191_s26] sm:$0xf]  ;;  %vm243_vm1 = vcmask 261120   ;;  %s411_s20 = sshll.u32 %s634_s15, 6  ;;  %s217_s27 = scalar_lea.vmem [#allocation7], %s403_s11  ;;  %vm288_vm2 = vcmask 781312  }
  0x3f   : > { %418 = vmatpush3.bf16.msra.mxu0 %v502_v1  ;;  %v406_v4 = vld [vmem:[%s855_s2] ss:$0 sm:$0xff]  ;;  %s305_s29 = sshll.u32 %s217_s27, 4  ;;  %s805_s21 = scalar_lea.hbm %s856_s3, %s411_s20  ;;  %s807_s29 = int_to_ptr.vmem [resolvable:$true] %s305_s29 }
  0x40   : > { %419 = vmatprep.subr.bf16.mxu0 %v648_v0  ;;  %s291_s15 = scalar_lea.sflag [#allocation4], %s786_s8  ;;  %s558_s5 = scalar_lea.vmem %s807_s29, 64 }
  0x41   : > { %p559_p1 = scmp.ne.s32.totalorder %s807_s29, %s558_s5  ;;  %s650_s6 = smov [#allocation7]  }
  0x42   : > { %s562_s7 = sshll.u32 %s650_s6, 4  ;;  %s563_s7 = int_to_ptr.vmem [resolvable:$false] %s562_s7 }
  0x43   : > { %420 = vmatpush3.bf16.msra.mxu0 %v503_v2  ;;  %p560_p8 = pnand %p559_p1, %p758_p13  ;;  %s564_s10 = scalar_lea.vmem %s563_s7, 128 }
  0x44   : > { %p565_p0 = scmp.lt.s32.totalorder %s807_s29, %s563_s7  ;;  %p566_p2 = scmp.lt.s32.totalorder %s564_s10, %s558_s5 }
  0x45   : > { %p561_p10 = pneg %p560_p8 }
  0x46   : > { %422 = vmatmul.mubr.msk.bf16.vlgmr.msra.gmra.mxu0 %vm243_vm1, %v219_v3  ;;  %p567_p3 = por %p566_p2, %p565_p0 }
  0x48   : > { %p568_p5 = pnand %p567_p3, %p561_p10 }
 0x106   : > { %v281_v5 = vpop.f32.mrf.mxu0 }
 0x107   : > { %v282_v6 = vadd.f32 %v406_v4, %v281_v5 }
 0x108   : > { %v423_v7 = vpop.f32.mrf.mxu0 }
 0x109   : > { %v287_v8 = vpack.c.bf16 %v282_v6, %v282_v6 }
 0x10a   : > { %v284_v9 = vpop.f32.mrf.mxu0 }
 0x10b   : > { %289 = vst.msk [vmem:[%s217_s27] sm:$0xf] %vm288_vm2, %v287_v8 }
 0x10c   : > { %v424_v10 = vpop.f32.mrf.mxu0 }
 0x10d   : > { %571 = shalt.err (!%p568_p5)
}
 0x10e   : > { %s572_s25 = scalar_lea.hbm %s805_s21, 64  ;;  %s576_s18 = scalar_lea.hbm %s856_s3, 128 }
 0x10f   : > { %p573_p7 = scmp.ne.s32.totalorder %s805_s21, %s572_s25  ;;  %p577_p9 = scmp.lt.s32.totalorder %s805_s21, %s856_s3 }
 0x110   : > { %p578_p11 = scmp.lt.s32.totalorder %s576_s18, %s572_s25 }
 0x111   : > { %p574_p6 = pnand %p573_p7, %p758_p13 }
 0x112   : > { %p579_p12 = por %p578_p11, %p577_p9 }
 0x113   : > { %p575_p4 = pneg %p574_p6 }
 0x115   : > { %p580_p1 = pnand %p579_p12, %p575_p4 }
 0x117   : > { %583 = shalt.err (!%p580_p1)
}
 0x118   : > { %431 = dma.vmem_to_hbm [thread:$0]  (%p758_p13), %s807_s29, 64, %s805_s21, %s291_s15  }
 0x119 PF: > { %s317_s24 = sand.u32 1, %s622_s12   ;;  %p868_p8 = scmp.ne.s32.totalorder %s861_s23, 0 }
 0x11a   : > { %p869_p10 = scmp.ge.s32.totalorder %s642_s17, 2  ;;  %s318_s20 = scalar_lea.sflag [#allocation4], %s317_s24 }
 0x11c   : > { %p442_p0 = pnand %p869_p10, %p868_p8 }
 0x11e   : > { %p443_p2 = pneg %p442_p0 }
 0x120   : > { %617 = dma.done.wait (%p443_p2), %s318_s20, 64  }
 0x121   : > { %619 = vsyncadd (%p443_p2), %s318_s20, 4294967232  ;;  %s20_s17 = sadd.s32 1, %s642_s17   ;;  %s870_s12 = smov %s626_s13 }
 0x122   : > { %p17_p3 = scmp.ge.s32.totalorder %s20_s17, 4   ;;  %s871_s13 = smov %s630_s14 }
 0x123   : > { %s872_s14 = smov %s767_s19  ;;  %s873_s15 = smov %s638_s16 }
 0x124   : > { %s874_s16 = smov %s876_s28  ;;  %19 = sbr.rel (!%p17_p3) target bundleno = 7 (0x7), region = 81 }
 0x129   :  { %323 = vsyncpa [#allocation3], 1 }
 0x12a   :  { %325 = vsyncpa [#allocation3 + $0x1], 1 }
 0x12b   :  { %326 = vsyncpa [#allocation6], 1 }
 0x12c   :  { %327 = vsyncpa [#allocation4], 1 }
 0x12d   :  { %329 = vsyncpa [#allocation4 + $0x1], 1 }

</bundles_post_ra>
